<compile_context>
chip_gen: v7x
topology: tpu7x:2x2x1
jax: 0.10.0
libtpu: 0.0.40
codegen_flags: <defaults>
</compile_context>

<pallas_src>
import functools

import numpy as np
import jax
import jax.numpy as jnp
from jax import lax
from jax.experimental import pallas as pl
from jax.experimental.pallas import tpu as pltpu


# ------------------------------ small helpers ---------------------------------


def _round_up(x, m):
    return (x + m - 1) // m * m


def _largest_divisor_leq(n, cap):
    cap = max(1, min(int(cap), int(n)))
    for t in range(cap, 0, -1):
        if n % t == 0:
            return t
    return 1


def _vmem_limit_bytes(estimate):
    # Tight request sized to the kernel's actual tiles + headroom for Mosaic internals.
    # (Feedback: drop the 32 MiB floor / 64 MiB blanket clamp; keep v7x headroom.)
    return int(min(int(estimate) + (8 << 20), 56 << 20))


# --------------------------- qkv projection kernel ----------------------------


def _qkv_linear_kernel(x_ref, w_ref, o_ref, acc_ref, *, heads_per_block, head_dim):
    @pl.when(pl.program_id(2) == 0)
    def _():
        acc_ref[...] = jnp.zeros_like(acc_ref)

    # (tm, tk) x (tn, tk): contract the shared last dims -- weights stay in PyTorch
    # (out_features, in_features) layout, no transposed copy. bf16 operands, f32 acc.
    acc_ref[...] += lax.dot_general(
        x_ref[...], w_ref[...], (((1,), (1,)), ((), ())),
        preferred_element_type=jnp.float32)

    @pl.when(pl.program_id(2) == pl.num_programs(2) - 1)
    def _():
        acc = acc_ref[...]
        # Static epilogue split of the wide (tm, hpb*hd) accumulator into per-head planes.
        for p in range(heads_per_block):
            o_ref[p] = acc[:, p * head_dim:(p + 1) * head_dim].astype(o_ref.dtype)


def qkv_linear(x, w, *, head_dim, tm=256, tk=512, target_lanes=512):
    """x: (M, K) bf16; w: (N=3C, K) bf16 nn.Linear weight (PyTorch (out, in) layout).

    Returns (N // head_dim, M, head_dim) bf16 with out[j, m, d] == (x @ w.T)[m, j*hd + d],
    i.e. directly in [k | q | v] x head-split layout.  The matmul itself runs with a wide
    N tile (heads_per_block * head_dim lanes) so the MXU N dimension and the weight stream
    are lane-dense; the per-head split only happens in the K-loop epilogue.
    """
    M, K = x.shape
    N, K2 = w.shape
    assert K == K2 and N % head_dim == 0
    n_blocks = N // head_dim                      # = 3 * n_head
    tm = _largest_divisor_leq(M, tm)
    tk = _largest_divisor_leq(K, tk)
    hpb = _largest_divisor_leq(n_blocks, max(1, target_lanes // head_dim))
    tn = hpb * head_dim
    grid = (M // tm, n_blocks // hpb, K // tk)

    est = (2 * 2 * (tm * tk + tn * tk)                          # x/w blocks, 2x buffered, bf16
           + 2 * 2 * hpb * tm * _round_up(head_dim, 128)        # out block, 2x buffered
           + 4 * tm * tn)                                       # f32 accumulator
    kern = functools.partial(_qkv_linear_kernel, heads_per_block=hpb, head_dim=head_dim)
    return pl.pallas_call(
        kern,
        out_shape=jax.ShapeDtypeStruct((n_blocks, M, head_dim), x.dtype),
        grid_spec=pltpu.PrefetchScalarGridSpec(
            num_scalar_prefetch=0,
            grid=grid,
            in_specs=[
                pl.BlockSpec((tm, tk), lambda i, j, k: (i, k)),
                pl.BlockSpec((tn, tk), lambda i, j, k: (j, k)),
            ],
            out_specs=pl.BlockSpec((hpb, tm, head_dim), lambda i, j, k: (j, i, 0)),
            scratch_shapes=[pltpu.VMEM((tm, tn), jnp.float32)],
        ),
        compiler_params=pltpu.CompilerParams(
            dimension_semantics=("parallel", "parallel", "arbitrary"),
            vmem_limit_bytes=_vmem_limit_bytes(est),
        ),
        cost_estimate=pl.CostEstimate(
            flops=2 * M * N * K,
            transcendentals=0,
            bytes_accessed=2 * (M * K + N * K + M * N),
        ),
    )(x, w)


# --------------------------- flash attention kernel ---------------------------


def _flash_attention_kernel(qi_tbl_ref, ki_tbl_ref, q_ref, k_ref, v_ref, o_ref,
                            m_scr, l_scr, acc_scr,
                            *, n_head, block_q, block_k, head_dim):
    s_idx = pl.program_id(1)
    qi = qi_tbl_ref[s_idx]
    ki = ki_tbl_ref[s_idx]

    @pl.when(ki == 0)  # first kv block of this q row: reset running stats
    def _():
        m_scr[...] = jnp.full_like(m_scr, -jnp.inf)
        l_scr[...] = jnp.zeros_like(l_scr)
        acc_scr[...] = jnp.zeros_like(acc_scr)

    # Blocks are (1, H, 1, bq/bk, hd); dropping size-1 axes is a free reshape.
    q = q_ref[...].reshape(n_head, block_q, head_dim)   # bf16 (scale folded into w_attn)
    k = k_ref[...].reshape(n_head, block_k, head_dim)
    v = v_ref[...].reshape(n_head, block_k, head_dim)

    # q @ k^T per head, contracting the shared head dim (no transposed K materialized).
    s = jnp.einsum("hqd,hkd->hqk", q, k, preferred_element_type=jnp.float32)

    def update(scores):
        # Online softmax update. All elementwise math in f32 (v5e-safe).
        # TODO(synk): bf16 exp path for v6e/v7x (EUP-bound at small head_dim).
        m_prev = m_scr[...]                                             # (H, bq, 1)
        m_next = jnp.maximum(m_prev, jnp.max(scores, axis=-1, keepdims=True))
        alpha = jnp.exp(m_prev - m_next)
        p = jnp.exp(scores - m_next)
        l_scr[...] = alpha * l_scr[...] + jnp.sum(p, axis=-1, keepdims=True)
        acc_scr[...] = alpha * acc_scr[...] + jnp.einsum(
            "hqk,hkd->hqd", p.astype(v.dtype), v, preferred_element_type=jnp.float32)
        m_scr[...] = m_next

    diag = ki == qi

    @pl.when(jnp.logical_not(diag))     # strictly-below-diagonal blocks: no mask needed
    def _():
        update(s)

    @pl.when(diag)                      # diagonal block: mask + finalize (last ki for qi)
    def _():
        row = lax.broadcasted_iota(jnp.int32, (block_q, block_k), 0)
        col = lax.broadcasted_iota(jnp.int32, (block_q, block_k), 1)
        update(jnp.where((col <= row)[None, :, :], s, -jnp.inf))

        inv_l = pl.reciprocal(l_scr[...], approx=True)                  # EUP slot
        out = (acc_scr[...] * inv_l).transpose(1, 0, 2)                 # (bq, H, hd) f32
        o_ref[0] = out.astype(o_ref.dtype)


def flash_attention(qkv, *, block_q=256):
    """qkv: (3, H, B, T, hd) bf16, leading axis ordered [k, q, v] (PyTorch split order).

    Returns (B, T, H, hd) bf16 -- a free view of the head-merged (B*T, C) activation, so
    the output projection runs as a plain full-depth GEMM.  The grid is a lower-triangular
    (qi, ki) schedule driven by scalar-prefetched SMEM tables: no steps are spent on fully
    masked blocks, and the in-block causal mask is only applied on the diagonal step.
    """
    three, H, B, T, hd = qkv.shape
    assert three == 3
    block_q = _largest_divisor_leq(T, block_q)
    block_k = block_q
    nq = T // block_q

    steps = [(qi, ki) for qi in range(nq) for ki in range(qi + 1)]
    qi_tbl = jnp.asarray(np.array([s[0] for s in steps], dtype=np.int32))
    ki_tbl = jnp.asarray(np.array([s[1] for s in steps], dtype=np.int32))
    n_steps = len(steps)

    q_spec = pl.BlockSpec((1, H, 1, block_q, hd),
                          lambda b, s, qi_t, ki_t: (1, 0, b, qi_t[s], 0))
    k_spec = pl.BlockSpec((1, H, 1, block_k, hd),
                          lambda b, s, qi_t, ki_t: (0, 0, b, ki_t[s], 0))
    v_spec = pl.BlockSpec((1, H, 1, block_k, hd),
                          lambda b, s, qi_t, ki_t: (2, 0, b, ki_t[s], 0))
    o_spec = pl.BlockSpec((1, block_q, H, hd),
                          lambda b, s, qi_t, ki_t: (b, qi_t[s], 0, 0))

    hd_p = _round_up(hd, 128)
    est = (2 * 2 * 3 * H * block_q * hd_p          # q/k/v blocks, double-buffered bf16
           + 2 * 2 * block_q * H * hd_p            # out block, double-buffered bf16
           + 4 * H * block_q * (hd_p + 2 * 128)    # acc/m/l f32 scratch
           + 3 * 4 * H * block_q * block_k)        # s/p f32 temporaries
    kern = functools.partial(_flash_attention_kernel, n_head=H,
                             block_q=block_q, block_k=block_k, head_dim=hd)
    return pl.pallas_call(
        kern,
        out_shape=jax.ShapeDtypeStruct((B, T, H, hd), qkv.dtype),
        grid_spec=pltpu.PrefetchScalarGridSpec(
            num_scalar_prefetch=2,
            grid=(B, n_steps),
            in_specs=[q_spec, k_spec, v_spec],
            out_specs=o_spec,
            scratch_shapes=[
                pltpu.VMEM((H, block_q, 1), jnp.float32),    # running max m
                pltpu.VMEM((H, block_q, 1), jnp.float32),    # running sum l
                pltpu.VMEM((H, block_q, hd), jnp.float32),   # output accumulator
            ],
        ),
        compiler_params=pltpu.CompilerParams(
            dimension_semantics=("parallel", "arbitrary"),
            vmem_limit_bytes=_vmem_limit_bytes(est),
        ),
        cost_estimate=pl.CostEstimate(
            flops=2 * B * H * T * T * hd,            # ~causal half of 2*(QK^T + PV)
            transcendentals=B * H * T * T // 2,
            bytes_accessed=2 * 4 * B * H * T * hd,
        ),
    )(qi_tbl, ki_tbl, qkv, qkv, qkv)


# ------------------------------ output projection -----------------------------


def _out_proj_kernel(a_ref, w_ref, o_ref, acc_ref):
    @pl.when(pl.program_id(2) == 0)
    def _():
        acc_ref[...] = jnp.zeros_like(acc_ref)

    acc_ref[...] += lax.dot_general(
        a_ref[...], w_ref[...], (((1,), (1,)), ((), ())),
        preferred_element_type=jnp.float32)

    @pl.when(pl.program_id(2) == pl.num_programs(2) - 1)
    def _():
        o_ref[...] = acc_ref[...].astype(o_ref.dtype)


def out_projection(a, w, *, out_dtype, tm=256, tn=512, tk=512):
    """a: (M, C) bf16 (head-merged attention output view); w: (C_out, C) bf16.

    Plain tiled GEMM with the full embedding dimension as the reduction axis (K = C) and a
    lane-dense (tm, tn) output block.  Returns (M, C_out) in out_dtype.
    """
    M, K = a.shape
    N, K2 = w.shape
    assert K == K2
    tm = _largest_divisor_leq(M, tm)
    tn = _largest_divisor_leq(N, tn)
    tk = _largest_divisor_leq(K, tk)
    grid = (M // tm, N // tn, K // tk)

    est = 2 * 2 * (tm * tk + tn * tk) + 2 * 4 * tm * tn + 4 * tm * tn
    return pl.pallas_call(
        _out_proj_kernel,
        out_shape=jax.ShapeDtypeStruct((M, N), out_dtype),
        grid_spec=pltpu.PrefetchScalarGridSpec(
            num_scalar_prefetch=0,
            grid=grid,
            in_specs=[
                pl.BlockSpec((tm, tk), lambda i, j, k: (i, k)),
                pl.BlockSpec((tn, tk), lambda i, j, k: (j, k)),
            ],
            out_specs=pl.BlockSpec((tm, tn), lambda i, j, k: (i, j)),
            scratch_shapes=[pltpu.VMEM((tm, tn), jnp.float32)],
        ),
        compiler_params=pltpu.CompilerParams(
            dimension_semantics=("parallel", "parallel", "arbitrary"),
            vmem_limit_bytes=_vmem_limit_bytes(est),
        ),
        cost_estimate=pl.CostEstimate(
            flops=2 * M * N * K,
            transcendentals=0,
            bytes_accessed=2 * (M * K + N * K) + 4 * M * N,
        ),
    )(a, w)


# ------------------------------- module wrapper --------------------------------


def causal_self_attention(x, w_attn, w_proj, n_head):
    """Forward pass matching the PyTorch module (inference / dropout off).

    x      : (B, T, C) float32
    w_attn : (3C, C)  -- nn.Linear(n_embd, 3*n_embd, bias=False).weight
    w_proj : (C, C)   -- nn.Linear(n_embd, n_embd, bias=False).weight
    """
    B, T, C = x.shape
    H = n_head
    hd = C // H

    # Parameter prep (hoist to init time in a real model): bf16 weights with the softmax
    # scale C**-0.5 folded into the q rows (rows [C, 2C)) of w_attn.
    scale = float(C) ** -0.5
    w_attn_prep = (w_attn.at[C:2 * C, :].multiply(scale)).astype(jnp.bfloat16)
    w_proj_bf16 = w_proj.astype(jnp.bfloat16)
    x_bf16 = x.astype(jnp.bfloat16)

    # 1) Fused qkv projection; lands directly in [k|q|v] x head-split layout.
    qkv = qkv_linear(x_bf16.reshape(B * T, C), w_attn_prep, head_dim=hd)   # (3H, B*T, hd)
    qkv = qkv.reshape(3, H, B, T, hd)            # pure view: no data movement

    # 2) Causal flash attention over a triangular block schedule; output already in the
    #    head-merged (B, T, H, hd) == (B*T, C) layout.
    att = flash_attention(qkv)

    # 3) Output projection as a plain full-depth GEMM (K = C), f32 result.
    out = out_projection(att.reshape(B * T, C), w_proj_bf16, out_dtype=x.dtype)
    return out.reshape(B, T, C)


# --------------------------------- reference -----------------------------------


def _reference(x, w_attn, w_proj, n_head):
    B, T, C = x.shape
    hd = C // n_head
    qkv = jnp.einsum("btc,fc->btf", x, w_attn)
    k, q, v = jnp.split(qkv, 3, axis=2)          # PyTorch split order: k, q, v

    def heads(t):
        return t.reshape(B, T, n_head, hd).transpose(0, 2, 1, 3)

    k, q, v = heads(k), heads(q), heads(v)
    wei = jnp.einsum("bhqd,bhkd->bhqk", q, k) * (C ** -0.5)
    mask = jnp.tril(jnp.ones((T, T), dtype=bool))
    wei = jnp.where(mask[None, None], wei, -jnp.inf)
    wei = jax.nn.softmax(wei, axis=-1)
    out = jnp.einsum("bhqk,bhkd->bhqd", wei, v)
    out = out.transpose(0, 2, 1, 3).reshape(B, T, C)
    return jnp.einsum("btc,oc->bto", out, w_proj)


# ----------------------------------- main ---------------------------------------


if __name__ == "__main__":
    # Small shapes consistent with the module: B=2, T=8, n_embd=32, n_head=4.
    B, T = 2, 8
    n_embd = 32
    n_head = 4
    dropout = 0.0  # inference; dropout layers are identity

    key = jax.random.PRNGKey(0)
    kx, ka, kp = jax.random.split(key, 3)

    x = jax.random.normal(kx, (B, T, n_embd), dtype=jnp.float32)
    # nn.Linear weights: (out_features, in_features), uniform(-1/sqrt(in), 1/sqrt(in))
    bound = 1.0 / (n_embd ** 0.5)
    w_attn = jax.random.uniform(
        ka, (3 * n_embd, n_embd), minval=-bound, maxval=bound, dtype=jnp.float32
    )
    w_proj = jax.random.uniform(
        kp, (n_embd, n_embd), minval=-bound, maxval=bound, dtype=jnp.float32
    )

    out = causal_self_attention(x, w_attn, w_proj, n_head)
    out = jax.block_until_ready(out)
    assert out.shape == (B, T, n_embd)

    # Sanity check vs pure-JAX f32 reference (tolerance accounts for bf16 intermediates).
    ref = _reference(x, w_attn, w_proj, n_head)
    max_err = float(jnp.max(jnp.abs(out - ref)))
    assert jnp.allclose(out, ref, atol=4e-2, rtol=4e-2), f"max abs err {max_err}"

    print("KERNEL_OK")
</pallas_src>

<mosaic_0001>
module attributes {stable_mosaic.version = 11 : i64} {
  func.func @_qkv_linear_kernel(%arg0: i32, %arg1: i32, %arg2: i32, %arg3: memref<16x32xbf16, #tpu.memory_space<vmem>>, %arg4: memref<96x32xbf16, #tpu.memory_space<vmem>>, %arg5: memref<12x16x8xbf16, #tpu.memory_space<vmem>>, %arg6: memref<16x96xf32, #tpu.memory_space<vmem>>) attributes {dimension_semantics = [#tpu.dimension_semantics<parallel>, #tpu.dimension_semantics<parallel>, #tpu.dimension_semantics<arbitrary>], iteration_bounds = array<i64: 1, 1, 1>, scalar_prefetch = 0 : i64, scratch_operands = 1 : i64, tpu.core_type = #tpu.core_type<tc>, window_params = [{transform_indices = @transform_0, window_bounds = array<i64: 16, 32>}, {transform_indices = @transform_1, window_bounds = array<i64: 96, 32>}, {transform_indices = @transform_2, window_bounds = array<i64: 12, 16, 8>}]} {
    %c0_i32 = arith.constant 0 : i32
    %0 = arith.cmpi eq, %arg2, %c0_i32 : i32
    %1 = arith.extui %0 : i1 to i32
    %c0_i32_0 = arith.constant 0 : i32
    %2 = arith.cmpi ne, %1, %c0_i32_0 : i32
    scf.if %2 {
      %cst_10 = arith.constant 0.000000e+00 : f32
      %12 = vector.broadcast %cst_10 : f32 to vector<16x96xf32>
      %c0_11 = arith.constant 0 : index
      %c0_12 = arith.constant 0 : index
      %13 = vector.load %arg6[%c0_11, %c0_12] : memref<16x96xf32, #tpu.memory_space<vmem>>, vector<16x96xf32>
      tpu.vector_store %arg6[%c0_11, %c0_12], %12 {strides = array<i32>} : memref<16x96xf32, #tpu.memory_space<vmem>>, vector<16x96xf32>,
    } else {
    }
    %c0 = arith.constant 0 : index
    %c0_1 = arith.constant 0 : index
    %3 = vector.load %arg6[%c0, %c0_1] : memref<16x96xf32, #tpu.memory_space<vmem>>, vector<16x96xf32>
    %c0_2 = arith.constant 0 : index
    %c0_3 = arith.constant 0 : index
    %4 = vector.load %arg3[%c0_2, %c0_3] : memref<16x32xbf16, #tpu.memory_space<vmem>>, vector<16x32xbf16>
    %c0_4 = arith.constant 0 : index
    %c0_5 = arith.constant 0 : index
    %5 = vector.load %arg4[%c0_4, %c0_5] : memref<96x32xbf16, #tpu.memory_space<vmem>>, vector<96x32xbf16>
    %cst = arith.constant dense<0.000000e+00> : vector<16x96xf32>
    %6 = tpu.matmul %4, %5, %cst {dimension_numbers = #tpu.dot_dimension_numbers<[1], [1], [0], [0], [0, 0, 1, 0], [], []>} : vector<16x32xbf16>, vector<96x32xbf16>, vector<16x96xf32> -> vector<16x96xf32>
    %7 = arith.addf %3, %6 : vector<16x96xf32>
    %c0_6 = arith.constant 0 : index
    %c0_7 = arith.constant 0 : index
    %8 = vector.load %arg6[%c0_6, %c0_7] : memref<16x96xf32, #tpu.memory_space<vmem>>, vector<16x96xf32>
    tpu.vector_store %arg6[%c0_6, %c0_7], %7 {strides = array<i32>} : memref<16x96xf32, #tpu.memory_space<vmem>>, vector<16x96xf32>,
    %c0_i32_8 = arith.constant 0 : i32
    %9 = arith.cmpi eq, %arg2, %c0_i32_8 : i32
    %10 = arith.extui %9 : i1 to i32
    %c0_i32_9 = arith.constant 0 : i32
    %11 = arith.cmpi ne, %10, %c0_i32_9 : i32
    scf.if %11 {
      %c0_10 = arith.constant 0 : index
      %c0_11 = arith.constant 0 : index
      %12 = vector.load %arg6[%c0_10, %c0_11] : memref<16x96xf32, #tpu.memory_space<vmem>>, vector<16x96xf32>
      %13 = vector.extract_strided_slice %12 {offsets = [0, 0], sizes = [16, 8], strides = [1, 1]} : vector<16x96xf32> to vector<16x8xf32>
      %14 = arith.truncf %13 : vector<16x8xf32> to vector<16x8xbf16>
      %c0_12 = arith.constant 0 : index
      %c0_13 = arith.constant 0 : index
      %c0_14 = arith.constant 0 : index
      %15 = vector.load %arg5[%c0_12, %c0_13, %c0_14] : memref<12x16x8xbf16, #tpu.memory_space<vmem>>, vector<1x16x8xbf16>
      %16 = vector.shape_cast %15 : vector<1x16x8xbf16> to vector<16x8xbf16>
      %17 = vector.shape_cast %14 : vector<16x8xbf16> to vector<1x16x8xbf16>
      tpu.vector_store %arg5[%c0_12, %c0_13, %c0_14], %17 {strides = array<i32>} : memref<12x16x8xbf16, #tpu.memory_space<vmem>>, vector<1x16x8xbf16>,
      %18 = vector.extract_strided_slice %12 {offsets = [0, 8], sizes = [16, 8], strides = [1, 1]} : vector<16x96xf32> to vector<16x8xf32>
      %19 = arith.truncf %18 : vector<16x8xf32> to vector<16x8xbf16>
      %c1 = arith.constant 1 : index
      %c0_15 = arith.constant 0 : index
      %c0_16 = arith.constant 0 : index
      %20 = vector.load %arg5[%c1, %c0_15, %c0_16] : memref<12x16x8xbf16, #tpu.memory_space<vmem>>, vector<1x16x8xbf16>
      %21 = vector.shape_cast %20 : vector<1x16x8xbf16> to vector<16x8xbf16>
      %22 = vector.shape_cast %19 : vector<16x8xbf16> to vector<1x16x8xbf16>
      tpu.vector_store %arg5[%c1, %c0_15, %c0_16], %22 {strides = array<i32>} : memref<12x16x8xbf16, #tpu.memory_space<vmem>>, vector<1x16x8xbf16>,
      %23 = vector.extract_strided_slice %12 {offsets = [0, 16], sizes = [16, 8], strides = [1, 1]} : vector<16x96xf32> to vector<16x8xf32>
      %24 = arith.truncf %23 : vector<16x8xf32> to vector<16x8xbf16>
      %c2 = arith.constant 2 : index
      %c0_17 = arith.constant 0 : index
      %c0_18 = arith.constant 0 : index
      %25 = vector.load %arg5[%c2, %c0_17, %c0_18] : memref<12x16x8xbf16, #tpu.memory_space<vmem>>, vector<1x16x8xbf16>
      %26 = vector.shape_cast %25 : vector<1x16x8xbf16> to vector<16x8xbf16>
      %27 = vector.shape_cast %24 : vector<16x8xbf16> to vector<1x16x8xbf16>
      tpu.vector_store %arg5[%c2, %c0_17, %c0_18], %27 {strides = array<i32>} : memref<12x16x8xbf16, #tpu.memory_space<vmem>>, vector<1x16x8xbf16>,
      %28 = vector.extract_strided_slice %12 {offsets = [0, 24], sizes = [16, 8], strides = [1, 1]} : vector<16x96xf32> to vector<16x8xf32>
      %29 = arith.truncf %28 : vector<16x8xf32> to vector<16x8xbf16>
      %c3 = arith.constant 3 : index
      %c0_19 = arith.constant 0 : index
      %c0_20 = arith.constant 0 : index
      %30 = vector.load %arg5[%c3, %c0_19, %c0_20] : memref<12x16x8xbf16, #tpu.memory_space<vmem>>, vector<1x16x8xbf16>
      %31 = vector.shape_cast %30 : vector<1x16x8xbf16> to vector<16x8xbf16>
      %32 = vector.shape_cast %29 : vector<16x8xbf16> to vector<1x16x8xbf16>
      tpu.vector_store %arg5[%c3, %c0_19, %c0_20], %32 {strides = array<i32>} : memref<12x16x8xbf16, #tpu.memory_space<vmem>>, vector<1x16x8xbf16>,
      %33 = vector.extract_strided_slice %12 {offsets = [0, 32], sizes = [16, 8], strides = [1, 1]} : vector<16x96xf32> to vector<16x8xf32>
      %34 = arith.truncf %33 : vector<16x8xf32> to vector<16x8xbf16>
      %c4 = arith.constant 4 : index
      %c0_21 = arith.constant 0 : index
      %c0_22 = arith.constant 0 : index
      %35 = vector.load %arg5[%c4, %c0_21, %c0_22] : memref<12x16x8xbf16, #tpu.memory_space<vmem>>, vector<1x16x8xbf16>
      %36 = vector.shape_cast %35 : vector<1x16x8xbf16> to vector<16x8xbf16>
      %37 = vector.shape_cast %34 : vector<16x8xbf16> to vector<1x16x8xbf16>
      tpu.vector_store %arg5[%c4, %c0_21, %c0_22], %37 {strides = array<i32>} : memref<12x16x8xbf16, #tpu.memory_space<vmem>>, vector<1x16x8xbf16>,
      %38 = vector.extract_strided_slice %12 {offsets = [0, 40], sizes = [16, 8], strides = [1, 1]} : vector<16x96xf32> to vector<16x8xf32>
      %39 = arith.truncf %38 : vector<16x8xf32> to vector<16x8xbf16>
      %c5 = arith.constant 5 : index
      %c0_23 = arith.constant 0 : index
      %c0_24 = arith.constant 0 : index
      %40 = vector.load %arg5[%c5, %c0_23, %c0_24] : memref<12x16x8xbf16, #tpu.memory_space<vmem>>, vector<1x16x8xbf16>
      %41 = vector.shape_cast %40 : vector<1x16x8xbf16> to vector<16x8xbf16>
      %42 = vector.shape_cast %39 : vector<16x8xbf16> to vector<1x16x8xbf16>
      tpu.vector_store %arg5[%c5, %c0_23, %c0_24], %42 {strides = array<i32>} : memref<12x16x8xbf16, #tpu.memory_space<vmem>>, vector<1x16x8xbf16>,
      %43 = vector.extract_strided_slice %12 {offsets = [0, 48], sizes = [16, 8], strides = [1, 1]} : vector<16x96xf32> to vector<16x8xf32>
      %44 = arith.truncf %43 : vector<16x8xf32> to vector<16x8xbf16>
      %c6 = arith.constant 6 : index
      %c0_25 = arith.constant 0 : index
      %c0_26 = arith.constant 0 : index
      %45 = vector.load %arg5[%c6, %c0_25, %c0_26] : memref<12x16x8xbf16, #tpu.memory_space<vmem>>, vector<1x16x8xbf16>
      %46 = vector.shape_cast %45 : vector<1x16x8xbf16> to vector<16x8xbf16>
      %47 = vector.shape_cast %44 : vector<16x8xbf16> to vector<1x16x8xbf16>
      tpu.vector_store %arg5[%c6, %c0_25, %c0_26], %47 {strides = array<i32>} : memref<12x16x8xbf16, #tpu.memory_space<vmem>>, vector<1x16x8xbf16>,
      %48 = vector.extract_strided_slice %12 {offsets = [0, 56], sizes = [16, 8], strides = [1, 1]} : vector<16x96xf32> to vector<16x8xf32>
      %49 = arith.truncf %48 : vector<16x8xf32> to vector<16x8xbf16>
      %c7 = arith.constant 7 : index
      %c0_27 = arith.constant 0 : index
      %c0_28 = arith.constant 0 : index
      %50 = vector.load %arg5[%c7, %c0_27, %c0_28] : memref<12x16x8xbf16, #tpu.memory_space<vmem>>, vector<1x16x8xbf16>
      %51 = vector.shape_cast %50 : vector<1x16x8xbf16> to vector<16x8xbf16>
      %52 = vector.shape_cast %49 : vector<16x8xbf16> to vector<1x16x8xbf16>
      tpu.vector_store %arg5[%c7, %c0_27, %c0_28], %52 {strides = array<i32>} : memref<12x16x8xbf16, #tpu.memory_space<vmem>>, vector<1x16x8xbf16>,
      %53 = vector.extract_strided_slice %12 {offsets = [0, 64], sizes = [16, 8], strides = [1, 1]} : vector<16x96xf32> to vector<16x8xf32>
      %54 = arith.truncf %53 : vector<16x8xf32> to vector<16x8xbf16>
      %c8 = arith.constant 8 : index
      %c0_29 = arith.constant 0 : index
      %c0_30 = arith.constant 0 : index
      %55 = vector.load %arg5[%c8, %c0_29, %c0_30] : memref<12x16x8xbf16, #tpu.memory_space<vmem>>, vector<1x16x8xbf16>
      %56 = vector.shape_cast %55 : vector<1x16x8xbf16> to vector<16x8xbf16>
      %57 = vector.shape_cast %54 : vector<16x8xbf16> to vector<1x16x8xbf16>
      tpu.vector_store %arg5[%c8, %c0_29, %c0_30], %57 {strides = array<i32>} : memref<12x16x8xbf16, #tpu.memory_space<vmem>>, vector<1x16x8xbf16>,
      %58 = vector.extract_strided_slice %12 {offsets = [0, 72], sizes = [16, 8], strides = [1, 1]} : vector<16x96xf32> to vector<16x8xf32>
      %59 = arith.truncf %58 : vector<16x8xf32> to vector<16x8xbf16>
      %c9 = arith.constant 9 : index
      %c0_31 = arith.constant 0 : index
      %c0_32 = arith.constant 0 : index
      %60 = vector.load %arg5[%c9, %c0_31, %c0_32] : memref<12x16x8xbf16, #tpu.memory_space<vmem>>, vector<1x16x8xbf16>
      %61 = vector.shape_cast %60 : vector<1x16x8xbf16> to vector<16x8xbf16>
      %62 = vector.shape_cast %59 : vector<16x8xbf16> to vector<1x16x8xbf16>
      tpu.vector_store %arg5[%c9, %c0_31, %c0_32], %62 {strides = array<i32>} : memref<12x16x8xbf16, #tpu.memory_space<vmem>>, vector<1x16x8xbf16>,
      %63 = vector.extract_strided_slice %12 {offsets = [0, 80], sizes = [16, 8], strides = [1, 1]} : vector<16x96xf32> to vector<16x8xf32>
      %64 = arith.truncf %63 : vector<16x8xf32> to vector<16x8xbf16>
      %c10 = arith.constant 10 : index
      %c0_33 = arith.constant 0 : index
      %c0_34 = arith.constant 0 : index
      %65 = vector.load %arg5[%c10, %c0_33, %c0_34] : memref<12x16x8xbf16, #tpu.memory_space<vmem>>, vector<1x16x8xbf16>
      %66 = vector.shape_cast %65 : vector<1x16x8xbf16> to vector<16x8xbf16>
      %67 = vector.shape_cast %64 : vector<16x8xbf16> to vector<1x16x8xbf16>
      tpu.vector_store %arg5[%c10, %c0_33, %c0_34], %67 {strides = array<i32>} : memref<12x16x8xbf16, #tpu.memory_space<vmem>>, vector<1x16x8xbf16>,
      %68 = vector.extract_strided_slice %12 {offsets = [0, 88], sizes = [16, 8], strides = [1, 1]} : vector<16x96xf32> to vector<16x8xf32>
      %69 = arith.truncf %68 : vector<16x8xf32> to vector<16x8xbf16>
      %c11 = arith.constant 11 : index
      %c0_35 = arith.constant 0 : index
      %c0_36 = arith.constant 0 : index
      %70 = vector.load %arg5[%c11, %c0_35, %c0_36] : memref<12x16x8xbf16, #tpu.memory_space<vmem>>, vector<1x16x8xbf16>
      %71 = vector.shape_cast %70 : vector<1x16x8xbf16> to vector<16x8xbf16>
      %72 = vector.shape_cast %69 : vector<16x8xbf16> to vector<1x16x8xbf16>
      tpu.vector_store %arg5[%c11, %c0_35, %c0_36], %72 {strides = array<i32>} : memref<12x16x8xbf16, #tpu.memory_space<vmem>>, vector<1x16x8xbf16>,
    } else {
    }
    return
  }
  func.func @transform_0(%arg0: i32, %arg1: i32, %arg2: i32) -> (i32, i32) {
    %c0_i32 = arith.constant 0 : i32
    return %arg0, %arg2 : i32, i32
  }
  func.func @transform_1(%arg0: i32, %arg1: i32, %arg2: i32) -> (i32, i32) {
    %c0_i32 = arith.constant 0 : i32
    return %arg1, %arg2 : i32, i32
  }
  func.func @transform_2(%arg0: i32, %arg1: i32, %arg2: i32) -> (i32, i32, i32) {
    %c0_i32 = arith.constant 0 : i32
    %c0_i32_0 = arith.constant 0 : i32
    return %arg1, %arg0, %c0_i32 : i32, i32, i32
  }
}

</mosaic_0001>

<bundles_post_ra>
// kernel: tpu_custom_call.1
= control target key start
LH: loop header
LB: loop body
LE: loop exit
PB: predicated region body
PF: predicated region fallthrough
CT: control target
= control target key end

     0   :  { %vm70_vm0 = vcmask 261120   ;;  %vm16_vm1 = vcmask 785408   ;;  %v334_v0 = vmov 0.0   ;;  %vm335_vm2 = vmmov 0   ;;  %s336_s23 = smov 112   ;;  %s337_s24 = smov 120   ;;  %s490_s1 = inlined_call_operand.vmem [shape: bf16[96,32], index: 1, kind: input, shape index: {}]   ;;  %s491_s0 = inlined_call_operand.vmem [shape: bf16[16,32], index: 0, kind: input, shape index: {}]   ;;  %s492_s2 = inlined_call_operand.vmem [shape: bf16[12,16,8], index: 2, kind: output, shape index: {}]  }
   0x1   :  { %298 = vmatprep.subr.bf16.mxu0 %v334_v0  ;;  %v327_v1 = vld [vmem:[%s490_s1] sm:$0xff]   ;;  %310 = vmatprep.mubr.msk.bf16.mxu0 %vm335_vm2, %v334_v0  ;;  %17 = vst.msk [vmem:[#allocation2] sm:$0xff] %vm16_vm1, %v334_v0  ;;  %18 = vst.msk [vmem:[#allocation2 + $0x8] sm:$0xff] %vm16_vm1, %v334_v0  ;;  %v328_v3 = vld [vmem:[%s490_s1 + $0x8] sm:$0xff]   ;;  %vm151_vm3 = vcmask 60416   ;;  %s338_s27 = smov 104  }
   0x2   :  { %v75_v2 = vsel %vm70_vm0, %v327_v1, 0  ;;  %v78_v4 = vsel %vm70_vm0, %v328_v3, 0  ;;  %v329_v5 = vld [vmem:[%s490_s1 + $0x10] sm:$0xff]   ;;  %v330_v7 = vld [vmem:[%s490_s1 + $0x18] sm:$0xff]   ;;  %v331_v9 = vld [vmem:[%s490_s1 + $0x20] sm:$0xff]   ;;  %s339_s28 = smov 96  }
   0x3   :  { %299 = vmatpush3.bf16.xpose.msra.mxu0 %v75_v2  ;;  %v81_v6 = vsel %vm70_vm0, %v329_v5, 0  ;;  %v84_v8 = vsel %vm70_vm0, %v330_v7, 0  ;;  %v87_v10 = vsel %vm70_vm0, %v331_v9, 0  ;;  %v332_v11 = vld [vmem:[%s490_s1 + $0x28] sm:$0xff]   ;;  %v333_v13 = vld [vmem:[%s491_s0] sm:$0xff]   ;;  %s340_s29 = smov 88  }
   0x4   :  { %300 = vmatprep.subr.bf16.mxu0 %v334_v0  ;;  %v90_v12 = vsel %vm70_vm0, %v332_v11, 0  ;;  %s341_s30 = smov 80   ;;  %s342_s3 = smov 72  }
   0x5   :  { %s343_s4 = smov 64   ;;  %s344_s5 = smov 56  }
   0x6   :  { %s345_s6 = smov 48   ;;  %s346_s7 = smov 40  }
   0x8   :  { %v19_v14 = vld [vmem:[#allocation2] sm:$0xff]  ;;  %v20_v16 = vld [vmem:[#allocation2 + $0x8] sm:$0xff] }
   0xb   :  { %301 = vmatpush3.bf16.xpose.msra.mxu0 %v78_v4 }
   0xc   :  { %302 = vmatprep.subr.bf16.mxu0 %v334_v0 }
  0x13   :  { %303 = vmatpush3.bf16.xpose.msra.mxu0 %v81_v6 }
  0x14   :  { %304 = vmatprep.subr.bf16.mxu0 %v334_v0 }
  0x1b   :  { %305 = vmatpush3.bf16.xpose.msra.mxu0 %v84_v8 }
  0x1c   :  { %306 = vmatprep.subr.bf16.mxu0 %v334_v0 }
  0x23   :  { %307 = vmatpush3.bf16.xpose.msra.mxu0 %v87_v10 }
  0x24   :  { %308 = vmatprep.subr.bf16.mxu0 %v334_v0 }
  0x2b   :  { %309 = vmatpush3.bf16.xpose.msra.mxu0 %v90_v12 }
  0x32   :  { %311 = vmatmul.mubr.msk.bf16.vlgmr.msra.gmra.mrb[0].mxu0 %vm70_vm0, %v333_v13 }
 0x105   :  { %v126_v15 = vpop.f32.mrb[0].mxu0 }
 0x106   :  { %v133_v17 = vadd.f32 %v126_v15, %v19_v14  ;;  %v312_v18 = vpop.f32.mrb[1].mxu0 }
 0x107   :  { %v129_v19 = vpop.f32.mrb[2].mxu0 }
 0x108   :  { %136 = vst.msk [vmem:[#allocation2] sm:$0xff] %vm16_vm1, %v133_v17  ;;  %v134_v20 = vadd.f32 %v129_v19, %v20_v16  ;;  %v313_v21 = vpop.f32.mrb[3].mxu0 }
 0x10a   :  { %137 = vst.msk [vmem:[#allocation2 + $0x8] sm:$0xff] %vm16_vm1, %v134_v20 }
 0x10f   :  { %v141_v22 = vld [vmem:[#allocation2] sm:$0xff] }
 0x110   :  { %v289_v23 = vpack.c.bf16 %v141_v22, %v141_v22 }
 0x111   :  { %v142_v24 = vld [vmem:[#allocation2 + $0x8] sm:$0xff] }
 0x112   :  { %152 = vst.msk [vmem:[%s492_s2] sm:$0xf] %vm151_vm3, %v289_v23  ;;  %v290_v25 = vpack.c.bf16 %v142_v24, %v142_v24  ;;  %163 = vrot.lane.b32.xlu1 %v289_v23, %s336_s23  ;;  %154 = vrot.lane.b32.xlu0 %v289_v23, %s337_s24 }
 0x114   :  { %153 = vst.msk [vmem:[%s492_s2 + $0x4] sm:$0xf] %vm151_vm3, %v290_v25 }
 0x116   :  { %172 = vrot.lane.b32.xlu0 %v289_v23, %s338_s27  ;;  %165 = vrot.lane.b32.xlu1 %v290_v25, %s336_s23 }
 0x11a   :  { %181 = vrot.lane.b32.xlu0 %v289_v23, %s339_s28  ;;  %174 = vrot.lane.b32.xlu1 %v290_v25, %s338_s27 }
 0x11e   :  { %190 = vrot.lane.b32.xlu0 %v289_v23, %s340_s29  ;;  %183 = vrot.lane.b32.xlu1 %v290_v25, %s339_s28 }
 0x122   :  { %199 = vrot.lane.b32.xlu0 %v289_v23, %s341_s30  ;;  %192 = vrot.lane.b32.xlu1 %v290_v25, %s340_s29 }
 0x126   :  { %208 = vrot.lane.b32.xlu0 %v289_v23, %s342_s3  ;;  %201 = vrot.lane.b32.xlu1 %v290_v25, %s341_s30 }
 0x12a   :  { %217 = vrot.lane.b32.xlu0 %v289_v23, %s343_s4  ;;  %210 = vrot.lane.b32.xlu1 %v290_v25, %s342_s3 }
 0x12e   :  { %226 = vrot.lane.b32.xlu0 %v289_v23, %s344_s5  ;;  %219 = vrot.lane.b32.xlu1 %v290_v25, %s343_s4 }
 0x132   :  { %235 = vrot.lane.b32.xlu0 %v289_v23, %s345_s6  ;;  %228 = vrot.lane.b32.xlu1 %v290_v25, %s344_s5 }
 0x136   :  { %237 = vrot.lane.b32.xlu1 %v290_v25, %s345_s6  ;;  %156 = vrot.lane.b32.xlu0 %v290_v25, %s337_s24 }
 0x13a   :  { %246 = vrot.lane.b32.xlu1 %v290_v25, %s346_s7  ;;  %244 = vrot.lane.b32.xlu0 %v289_v23, %s346_s7 }
 0x184   :  { %v164_v26 = vpop.permute.xlu1 %163  ;;  %v155_v27 = vpop.permute.xlu0 %154 }
 0x185   :  { %269 = vst.msk [vmem:[%s492_s2 + $0x10] sm:$0xf] %vm151_vm3, %v164_v26  ;;  %267 = vst.msk [vmem:[%s492_s2 + $0x8] sm:$0xf] %vm151_vm3, %v155_v27 }
 0x188   :  { %v173_v28 = vpop.permute.xlu0 %172  ;;  %v166_v29 = vpop.permute.xlu1 %165 }
 0x189   :  { %271 = vst.msk [vmem:[%s492_s2 + $0x18] sm:$0xf] %vm151_vm3, %v173_v28  ;;  %270 = vst.msk [vmem:[%s492_s2 + $0x14] sm:$0xf] %vm151_vm3, %v166_v29 }
 0x18c   :  { %v182_v30 = vpop.permute.xlu0 %181  ;;  %v175_v31 = vpop.permute.xlu1 %174 }
 0x18d   :  { %273 = vst.msk [vmem:[%s492_s2 + $0x20] sm:$0xf] %vm151_vm3, %v182_v30  ;;  %272 = vst.msk [vmem:[%s492_s2 + $0x1c] sm:$0xf] %vm151_vm3, %v175_v31 }
 0x190   :  { %v191_v32 = vpop.permute.xlu0 %190  ;;  %v184_v33 = vpop.permute.xlu1 %183 }
 0x191   :  { %275 = vst.msk [vmem:[%s492_s2 + $0x28] sm:$0xf] %vm151_vm3, %v191_v32  ;;  %274 = vst.msk [vmem:[%s492_s2 + $0x24] sm:$0xf] %vm151_vm3, %v184_v33 }
 0x194   :  { %v200_v34 = vpop.permute.xlu0 %199  ;;  %v193_v35 = vpop.permute.xlu1 %192 }
 0x195   :  { %277 = vst.msk [vmem:[%s492_s2 + $0x30] sm:$0xf] %vm151_vm3, %v200_v34  ;;  %276 = vst.msk [vmem:[%s492_s2 + $0x2c] sm:$0xf] %vm151_vm3, %v193_v35 }
 0x198   :  { %v209_v36 = vpop.permute.xlu0 %208  ;;  %v202_v37 = vpop.permute.xlu1 %201 }
 0x199   :  { %279 = vst.msk [vmem:[%s492_s2 + $0x38] sm:$0xf] %vm151_vm3, %v209_v36  ;;  %278 = vst.msk [vmem:[%s492_s2 + $0x34] sm:$0xf] %vm151_vm3, %v202_v37 }
 0x19c   :  { %v218_v38 = vpop.permute.xlu0 %217  ;;  %v211_v39 = vpop.permute.xlu1 %210 }
 0x19d   :  { %281 = vst.msk [vmem:[%s492_s2 + $0x40] sm:$0xf] %vm151_vm3, %v218_v38  ;;  %280 = vst.msk [vmem:[%s492_s2 + $0x3c] sm:$0xf] %vm151_vm3, %v211_v39 }
 0x1a0   :  { %v227_v40 = vpop.permute.xlu0 %226  ;;  %v220_v41 = vpop.permute.xlu1 %219 }
 0x1a1   :  { %283 = vst.msk [vmem:[%s492_s2 + $0x48] sm:$0xf] %vm151_vm3, %v227_v40  ;;  %282 = vst.msk [vmem:[%s492_s2 + $0x44] sm:$0xf] %vm151_vm3, %v220_v41 }
 0x1a4   :  { %v236_v42 = vpop.permute.xlu0 %235  ;;  %v229_v43 = vpop.permute.xlu1 %228 }
 0x1a5   :  { %285 = vst.msk [vmem:[%s492_s2 + $0x50] sm:$0xf] %vm151_vm3, %v236_v42  ;;  %284 = vst.msk [vmem:[%s492_s2 + $0x4c] sm:$0xf] %vm151_vm3, %v229_v43 }
 0x1a8   :  { %v238_v44 = vpop.permute.xlu1 %237  ;;  %v157_v45 = vpop.permute.xlu0 %156 }
 0x1a9   :  { %286 = vst.msk [vmem:[%s492_s2 + $0x54] sm:$0xf] %vm151_vm3, %v238_v44  ;;  %268 = vst.msk [vmem:[%s492_s2 + $0xc] sm:$0xf] %vm151_vm3, %v157_v45 }
 0x1ac   :  { %v247_v46 = vpop.permute.xlu1 %246  ;;  %v245_v47 = vpop.permute.xlu0 %244 }
 0x1ad   :  { %288 = vst.msk [vmem:[%s492_s2 + $0x5c] sm:$0xf] %vm151_vm3, %v247_v46  ;;  %287 = vst.msk [vmem:[%s492_s2 + $0x58] sm:$0xf] %vm151_vm3, %v245_v47 }

</bundles_post_ra>
